<compile_context>
chip_gen: v7x
topology: tpu7x:2x2x1
jax: 0.10.0
libtpu: 0.0.40
codegen_flags: <defaults>
</compile_context>

<pallas_src>
import jax
import jax.numpy as jnp
from jax.experimental import pallas as pl
from jax.experimental.pallas import tpu as pltpu


def _round_up(x, m):
    return (x + m - 1) // m * m


def _acp_kernel(ids_ref, x_ref, w1_ref, b1_ref, w2_ref, b2_ref, out_ref):
    # Block shapes:
    #   ids: (TILE_B, 1) int32            x  : (TILE_B, input_dim)  bf16
    #   w1 : (1, input_dim, hidden_dim)   b1 : (1, 1, hidden_dim)   (bf16 / f32)
    #   w2 : (1, hidden_dim, out_dim)     b2 : (1, 1, out_dim)      (bf16 / f32)
    #   out: (TILE_B, out_dim) f32  (accumulated across the aspect grid axis)
    a = pl.program_id(1)
    mask = ids_ref[...] == a                       # (TILE_B, 1) one-hot over aspects
    present = jnp.sum(mask.astype(jnp.float32)) > 0.0

    @pl.when(a == 0)
    def _init():
        # Rows whose aspect never matches (e.g. out-of-range ids) stay zero.
        out_ref[...] = jnp.zeros_like(out_ref)

    @pl.when(present)
    def _compute():
        x = x_ref[...]                             # bf16
        w1 = w1_ref[0]                             # bf16 (input_dim, hidden_dim)
        h = jnp.dot(x, w1, preferred_element_type=jnp.float32) + b1_ref[0]
        h = jnp.maximum(h, 0.0).astype(jnp.bfloat16)          # ReLU, bf16 for MXU
        logits = (jnp.dot(h, w2_ref[0], preferred_element_type=jnp.float32)
                  + b2_ref[0])                                 # (TILE_B, out_dim) f32
        out_ref[...] = jnp.where(mask, logits, out_ref[...])


def aspect_category_prediction_v3(X, aspect_ids, params):
    """X: (batch, input_dim) f32, aspect_ids: (batch,) or (batch, 1) int."""
    if aspect_ids.ndim == 2:
        aspect_ids = jnp.squeeze(aspect_ids, axis=-1)
    aspect_ids = aspect_ids.astype(jnp.int32)

    batch, input_dim = X.shape
    aspect_num, hidden_dim = params["b1_embs"].shape
    out_dim = params["b2_embs"].shape[1]           # = 2

    # Sample tile: multiple of 8 sublanes, up to 256 rows (fills the 2x256x256
    # MXU on v6e/v7x and halves per-aspect weight re-streaming vs 128).
    TILE_B = min(256, _round_up(batch, 8))
    padded_batch = _round_up(batch, TILE_B)
    pad_b = padded_batch - batch

    # bf16 activations / weights (f32 accumulation inside the kernel).
    Xp = jnp.pad(X, ((0, pad_b), (0, 0))).astype(jnp.bfloat16)
    idsp = jnp.pad(aspect_ids, (0, pad_b)).reshape(padded_batch, 1)

    W1 = params["W1_embs"].reshape(aspect_num, input_dim, hidden_dim).astype(jnp.bfloat16)
    b1 = params["b1_embs"].reshape(aspect_num, 1, hidden_dim).astype(jnp.float32)
    W2 = params["W2_embs"].reshape(aspect_num, hidden_dim, out_dim).astype(jnp.bfloat16)
    b2 = params["b2_embs"].reshape(aspect_num, 1, out_dim).astype(jnp.float32)

    grid = (padded_batch // TILE_B, aspect_num)

    out = pl.pallas_call(
        _acp_kernel,
        out_shape=jax.ShapeDtypeStruct((padded_batch, out_dim), jnp.float32),
        grid_spec=pltpu.PrefetchScalarGridSpec(
            num_scalar_prefetch=0,
            grid=grid,
            in_specs=[
                pl.BlockSpec((TILE_B, 1), lambda i, a: (i, 0)),
                # X stays resident across the inner aspect axis (same block
                # index for every a -> re-DMA only when the batch tile changes).
                pl.BlockSpec((TILE_B, input_dim), lambda i, a: (i, 0)),
                pl.BlockSpec((1, input_dim, hidden_dim), lambda i, a: (a, 0, 0)),
                pl.BlockSpec((1, 1, hidden_dim), lambda i, a: (a, 0, 0)),
                pl.BlockSpec((1, hidden_dim, out_dim), lambda i, a: (a, 0, 0)),
                pl.BlockSpec((1, 1, out_dim), lambda i, a: (a, 0, 0)),
            ],
            out_specs=pl.BlockSpec((TILE_B, out_dim), lambda i, a: (i, 0)),
        ),
        compiler_params=pltpu.CompilerParams(
            dimension_semantics=("parallel", "arbitrary"),
            vmem_limit_bytes=64 * 1024 * 1024,
        ),
    )(idsp, Xp, W1, b1, W2, b2)

    return out[:batch, :]


def _reference(X, aspect_ids, params, input_dim, hidden_dim):
    if aspect_ids.ndim == 2:
        aspect_ids = jnp.squeeze(aspect_ids, axis=-1)
    batch = X.shape[0]
    W1 = params["W1_embs"][aspect_ids].reshape(batch, input_dim, hidden_dim)
    b1 = params["b1_embs"][aspect_ids]
    W2 = params["W2_embs"][aspect_ids].reshape(batch, hidden_dim, 2)
    b2 = params["b2_embs"][aspect_ids]
    out1 = jnp.einsum("bi,bih->bh", X, W1) + b1
    out1 = jnp.maximum(out1, 0.0)
    return jnp.einsum("bh,bho->bo", out1, W2) + b2


if __name__ == "__main__":
    # Small, deterministic configuration.
    batch, input_dim, hidden_dim, aspect_num = 8, 32, 32, 6

    key = jax.random.PRNGKey(0)
    k1, k2, k3, k4, k5, k6 = jax.random.split(key, 6)

    params = {
        "W1_embs": jax.random.normal(k1, (aspect_num, input_dim * hidden_dim),
                                     jnp.float32) * 0.1,
        "b1_embs": jax.random.normal(k2, (aspect_num, hidden_dim),
                                     jnp.float32) * 0.1,
        "W2_embs": jax.random.normal(k3, (aspect_num, hidden_dim * 2),
                                     jnp.float32) * 0.1,
        "b2_embs": jax.random.normal(k4, (aspect_num, 2),
                                     jnp.float32) * 0.1,
    }

    X = jax.random.normal(k5, (batch, input_dim), jnp.float32)
    aspect_ids = jax.random.randint(k6, (batch,), 0, aspect_num, jnp.int32)

    logits = aspect_category_prediction_v3(X, aspect_ids, params)
    logits = jax.block_until_ready(logits)

    ref = _reference(X, aspect_ids, params, input_dim, hidden_dim)
    assert logits.shape == (batch, 2)
    # bf16 operands with f32 accumulation -> looser tolerance than pure f32.
    assert jnp.allclose(logits, ref, atol=5e-2, rtol=5e-2)

    print("KERNEL_OK")
</pallas_src>

<mosaic_0001>
module attributes {stable_mosaic.version = 11 : i64} {
  func.func @_acp_kernel(%arg0: i32, %arg1: i32, %arg2: memref<8x1xi32, #tpu.memory_space<vmem>>, %arg3: memref<8x32xbf16, #tpu.memory_space<vmem>>, %arg4: memref<1x32x32xbf16, #tpu.memory_space<vmem>>, %arg5: memref<1x1x32xf32, #tpu.memory_space<vmem>>, %arg6: memref<1x32x2xbf16, #tpu.memory_space<vmem>>, %arg7: memref<1x1x2xf32, #tpu.memory_space<vmem>>, %arg8: memref<8x2xf32, #tpu.memory_space<vmem>>) attributes {dimension_semantics = [#tpu.dimension_semantics<parallel>, #tpu.dimension_semantics<arbitrary>], iteration_bounds = array<i64: 1, 6>, scalar_prefetch = 0 : i64, scratch_operands = 0 : i64, tpu.core_type = #tpu.core_type<tc>, window_params = [{transform_indices = @transform_0, window_bounds = array<i64: 8, 1>}, {transform_indices = @transform_1, window_bounds = array<i64: 8, 32>}, {transform_indices = @transform_2, window_bounds = array<i64: 1, 32, 32>}, {transform_indices = @transform_3, window_bounds = array<i64: 1, 1, 32>}, {transform_indices = @transform_4, window_bounds = array<i64: 1, 32, 2>}, {transform_indices = @transform_5, window_bounds = array<i64: 1, 1, 2>}, {transform_indices = @transform_6, window_bounds = array<i64: 8, 2>}]} {
    %c0 = arith.constant 0 : index
    %c0_0 = arith.constant 0 : index
    %0 = vector.load %arg2[%c0, %c0_0] : memref<8x1xi32, #tpu.memory_space<vmem>>, vector<8x1xi32>
    %1 = vector.broadcast %arg1 : i32 to vector<8x1xi32>
    %2 = arith.cmpi eq, %0, %1 : vector<8x1xi32>
    %3 = arith.extui %2 : vector<8x1xi1> to vector<8x1xi32>
    %4 = arith.sitofp %3 : vector<8x1xi32> to vector<8x1xf32>
    %5 = vector.shape_cast %4 : vector<8x1xf32> to vector<1x8x1xf32>
    %cst = arith.constant dense<0.000000e+00> : vector<1xf32>
    %6 = vector.multi_reduction <add>, %5, %cst [1, 2] : vector<1x8x1xf32> to vector<1xf32>
    %7 = vector.shape_cast %6 : vector<1xf32> to vector<1x1x1xf32>
    %8 = vector.extract %7[0, 0, 0] : f32 from vector<1x1x1xf32>
    %cst_1 = arith.constant 0.000000e+00 : f32
    %9 = arith.cmpf ogt, %8, %cst_1 : f32
    %c0_i32 = arith.constant 0 : i32
    %10 = arith.cmpi eq, %arg1, %c0_i32 : i32
    %11 = arith.extui %10 : i1 to i32
    %c0_i32_2 = arith.constant 0 : i32
    %12 = arith.cmpi ne, %11, %c0_i32_2 : i32
    scf.if %12 {
      %cst_4 = arith.constant 0.000000e+00 : f32
      %15 = vector.broadcast %cst_4 : f32 to vector<8x2xf32>
      %c0_5 = arith.constant 0 : index
      %c0_6 = arith.constant 0 : index
      %16 = vector.load %arg8[%c0_5, %c0_6] : memref<8x2xf32, #tpu.memory_space<vmem>>, vector<8x2xf32>
      tpu.vector_store %arg8[%c0_5, %c0_6], %15 {strides = array<i32>} : memref<8x2xf32, #tpu.memory_space<vmem>>, vector<8x2xf32>,
    } else {
    }
    %13 = arith.extui %9 : i1 to i32
    %c0_i32_3 = arith.constant 0 : i32
    %14 = arith.cmpi ne, %13, %c0_i32_3 : i32
    scf.if %14 {
      %c0_4 = arith.constant 0 : index
      %c0_5 = arith.constant 0 : index
      %15 = vector.load %arg3[%c0_4, %c0_5] : memref<8x32xbf16, #tpu.memory_space<vmem>>, vector<8x32xbf16>
      %c0_6 = arith.constant 0 : index
      %c0_7 = arith.constant 0 : index
      %c0_8 = arith.constant 0 : index
      %16 = vector.load %arg4[%c0_6, %c0_7, %c0_8] : memref<1x32x32xbf16, #tpu.memory_space<vmem>>, vector<1x32x32xbf16>
      %17 = vector.shape_cast %16 : vector<1x32x32xbf16> to vector<32x32xbf16>
      %cst_9 = arith.constant dense<0.000000e+00> : vector<8x32xf32>
      %18 = tpu.matmul %15, %17, %cst_9 {dimension_numbers = #tpu.dot_dimension_numbers<[1], [0], [0], [1], [0, 0, 1, 1], [], []>} : vector<8x32xbf16>, vector<32x32xbf16>, vector<8x32xf32> -> vector<8x32xf32>
      %c0_10 = arith.constant 0 : index
      %c0_11 = arith.constant 0 : index
      %c0_12 = arith.constant 0 : index
      %19 = vector.load %arg5[%c0_10, %c0_11, %c0_12] : memref<1x1x32xf32, #tpu.memory_space<vmem>>, vector<1x1x32xf32>
      %20 = vector.shape_cast %19 : vector<1x1x32xf32> to vector<1x32xf32>
      %21 = vector.broadcast %20 : vector<1x32xf32> to vector<8x32xf32>
      %22 = arith.addf %18, %21 : vector<8x32xf32>
      %cst_13 = arith.constant 0.000000e+00 : f32
      %23 = vector.broadcast %cst_13 : f32 to vector<8x32xf32>
      %24 = arith.maximumf %22, %23 : vector<8x32xf32>
      %25 = arith.truncf %24 : vector<8x32xf32> to vector<8x32xbf16>
      %c0_14 = arith.constant 0 : index
      %c0_15 = arith.constant 0 : index
      %c0_16 = arith.constant 0 : index
      %26 = vector.load %arg6[%c0_14, %c0_15, %c0_16] : memref<1x32x2xbf16, #tpu.memory_space<vmem>>, vector<1x32x2xbf16>
      %27 = vector.shape_cast %26 : vector<1x32x2xbf16> to vector<32x2xbf16>
      %cst_17 = arith.constant dense<0.000000e+00> : vector<8x2xf32>
      %28 = tpu.matmul %25, %27, %cst_17 {dimension_numbers = #tpu.dot_dimension_numbers<[1], [0], [0], [1], [0, 0, 1, 1], [], []>} : vector<8x32xbf16>, vector<32x2xbf16>, vector<8x2xf32> -> vector<8x2xf32>
      %c0_18 = arith.constant 0 : index
      %c0_19 = arith.constant 0 : index
      %c0_20 = arith.constant 0 : index
      %29 = vector.load %arg7[%c0_18, %c0_19, %c0_20] : memref<1x1x2xf32, #tpu.memory_space<vmem>>, vector<1x1x2xf32>
      %30 = vector.shape_cast %29 : vector<1x1x2xf32> to vector<1x2xf32>
      %31 = vector.broadcast %30 : vector<1x2xf32> to vector<8x2xf32>
      %32 = arith.addf %28, %31 : vector<8x2xf32>
      %c0_21 = arith.constant 0 : index
      %c0_22 = arith.constant 0 : index
      %33 = vector.load %arg8[%c0_21, %c0_22] : memref<8x2xf32, #tpu.memory_space<vmem>>, vector<8x2xf32>
      %34 = vector.shape_cast %2 : vector<8x1xi1> to vector<8x1xi1>
      %35 = vector.broadcast %34 : vector<8x1xi1> to vector<8x2xi1>
      %36 = arith.select %35, %32, %33 : vector<8x2xi1>, vector<8x2xf32>
      %c0_23 = arith.constant 0 : index
      %c0_24 = arith.constant 0 : index
      %37 = vector.load %arg8[%c0_23, %c0_24] : memref<8x2xf32, #tpu.memory_space<vmem>>, vector<8x2xf32>
      tpu.vector_store %arg8[%c0_23, %c0_24], %36 {strides = array<i32>} : memref<8x2xf32, #tpu.memory_space<vmem>>, vector<8x2xf32>,
    } else {
    }
    return
  }
  func.func @transform_0(%arg0: i32, %arg1: i32) -> (i32, i32) {
    %c0_i32 = arith.constant 0 : i32
    %c0_i32_0 = arith.constant 0 : i32
    return %arg0, %c0_i32 : i32, i32
  }
  func.func @transform_1(%arg0: i32, %arg1: i32) -> (i32, i32) {
    %c0_i32 = arith.constant 0 : i32
    %c0_i32_0 = arith.constant 0 : i32
    return %arg0, %c0_i32 : i32, i32
  }
  func.func @transform_2(%arg0: i32, %arg1: i32) -> (i32, i32, i32) {
    %c0_i32 = arith.constant 0 : i32
    %c0_i32_0 = arith.constant 0 : i32
    %c0_i32_1 = arith.constant 0 : i32
    return %arg1, %c0_i32, %c0_i32_0 : i32, i32, i32
  }
  func.func @transform_3(%arg0: i32, %arg1: i32) -> (i32, i32, i32) {
    %c0_i32 = arith.constant 0 : i32
    %c0_i32_0 = arith.constant 0 : i32
    %c0_i32_1 = arith.constant 0 : i32
    return %arg1, %c0_i32, %c0_i32_0 : i32, i32, i32
  }
  func.func @transform_4(%arg0: i32, %arg1: i32) -> (i32, i32, i32) {
    %c0_i32 = arith.constant 0 : i32
    %c0_i32_0 = arith.constant 0 : i32
    %c0_i32_1 = arith.constant 0 : i32
    return %arg1, %c0_i32, %c0_i32_0 : i32, i32, i32
  }
  func.func @transform_5(%arg0: i32, %arg1: i32) -> (i32, i32, i32) {
    %c0_i32 = arith.constant 0 : i32
    %c0_i32_0 = arith.constant 0 : i32
    %c0_i32_1 = arith.constant 0 : i32
    return %arg1, %c0_i32, %c0_i32_0 : i32, i32, i32
  }
  func.func @transform_6(%arg0: i32, %arg1: i32) -> (i32, i32) {
    %c0_i32 = arith.constant 0 : i32
    %c0_i32_0 = arith.constant 0 : i32
    return %arg0, %c0_i32 : i32, i32
  }
}

</mosaic_0001>

<bundles_post_ra>
// kernel: tpu_custom_call.1
= control target key start
LH: loop header
LB: loop body
LE: loop exit
PB: predicated region body
PF: predicated region fallthrough
CT: control target
= control target key end

     0   :  { %s1539_s0 = inlined_call_operand.hbm [shape: s32[8,1], index: 0, kind: input, shape index: {}]   ;;  %s1540_s1 = inlined_call_operand.hbm [shape: bf16[8,32], index: 1, kind: input, shape index: {}]   ;;  %s1541_s2 = inlined_call_operand.hbm [shape: bf16[6,32,32], index: 2, kind: input, shape index: {}]   ;;  %s1542_s3 = inlined_call_operand.hbm [shape: f32[6,1,32], index: 3, kind: input, shape index: {}]   ;;  %s1543_s4 = inlined_call_operand.hbm [shape: bf16[6,32,2], index: 4, kind: input, shape index: {}]   ;;  %s1544_s5 = inlined_call_operand.hbm [shape: f32[6,1,2], index: 5, kind: input, shape index: {}]   ;;  %s1545_s6 = inlined_call_operand.hbm [shape: f32[8,2], index: 6, kind: output, shape index: {}]  }
   0x1   :  { %1562 = sst [smem:[#allocation20_spill]] %s1539_s0 }
   0x2   :  { %1563 = sst [smem:[#allocation21_spill]] %s1541_s2 }
   0x3   :  { %11 = vsyncpa [#allocation3], 0 }
   0x4   :  { %12 = vsyncpa [#allocation6], 0 }
   0x5   :  { %13 = vsyncpa [#allocation4], 0  ;;  %s1214_s21 = smov 0   ;;  %s1216_s22 = smov 0  }
   0x6   :  { %s1218_s23 = smov 0   ;;  %s1220_s24 = smov 0  }
   0x7   :  { %s1222_s25 = smov 0   ;;  %s1224_s26 = smov 0  }
   0x8 LB: > { %1564 = sst [smem:[#allocation16_spill]] %s1150_s23  ;;  %s1243_s27 = sadd.s32 4294967295, %s1162_s26   ;;  %s1162_s26 = sphi %s1224_s26, %s19_s26   ;;  %s1158_s25 = sphi %s1222_s25, %s1597_s25   ;;  %s1154_s24 = sphi %s1220_s24, %s1596_s24   ;;  %s1150_s23 = sphi %s1218_s23, %s1592_s23   ;;  %s1146_s22 = sphi %s1216_s22, %s1595_s22   ;;  %s1142_s21 = sphi %s1214_s21, %s1594_s21  }
   0x9   : > { %1565 = sst [smem:[#allocation17_spill]] %s1162_s26  ;;  %s90_s28 = sadd.s32 1, %s1150_s23 }
   0xa   : > { %p97_p0 = scmp.ne.s32.totalorder %s1150_s23, %s1146_s22  ;;  %p98_p1 = scmp.eq.s32.totalorder %s1162_s26, 0 }
   0xb   : > { %p103_p2 = scmp.ne.s32.totalorder %s1146_s22, %s1142_s21  ;;  %p1546_p3 = scmp.eq.s32.totalorder %s1243_s27, 0 }
   0xc   : > { %p99_p4 = por %p98_p1, %p97_p0  ;;  %p730_p5 = scmp.ge.s32.totalorder %s1162_s26, 1 }
   0xd   : > { %p1254_p6 = por %p1546_p3, %p103_p2  ;;  %p218_p7 = scmp.lt.s32.totalorder %s1162_s26, 7 }
   0xe   : > { %s1164_s7 = smov [#allocation2]   ;;  %p829_p10 = scmp.lt.s32.totalorder %s1162_s26, 6 }
   0xf   : > { %s1566_s29 = scalar_select %p1254_p6, 1, 0 }
  0x10   : > { %p1259_p8 = pnand %p730_p5, %p218_p7  ;;  %s233_s8 = sshll.u32 %s1164_s7, 4  ;;  %s234_s8 = int_to_ptr.vmem [resolvable:$true] %s233_s8 }
  0x11   : > { %s257_s9 = sand.u32 1, %s1162_s26   ;;  %p1273_p12 = pnand %p829_p10, %p99_p4 }
  0x12   : > { %s1567_s30 = scalar_select %p1259_p8, 1, 0 }
  0x13   : > { %p807_p9 = pneg %p1259_p8  ;;  %s1570_s0 = sld [smem:[#allocation20_spill]] }
  0x14   : > { %s1569_s11 = scalar_select %p1273_p12, 1, 0 }
  0x15   : > { %p1269_p11 = pnand %p807_p9, %p1546_p3 }
  0x17   : > { %s1568_s10 = scalar_select %p1269_p11, 1, 0 }
  0x18   : > { %p1552_p0 = pneg %p1269_p11 }
  0x19   : > { %s898_s14 = scalar_lea.hbm %s1570_s0, 128 }
  0x1a   : > { %p899_p13 = scmp.ne.s32.totalorder %s1570_s0, %s898_s14  ;;  %p905_p4 = scmp.lt.u32.totalorder %s898_s14, %s1570_s0 }
  0x1c   : > { %p901_p1 = pnand %p1552_p0, %p899_p13 }
  0x1e   : > { %p902_p2 = pneg %p901_p1 }
  0x20   : > { %p907_p5 = pnand %p905_p4, %p902_p2 }
  0x22   : > { %910 = shalt.err (!%p907_p5)
}
  0x23   : > { %s911_s19 = scalar_lea.vmem %s234_s8, 128  ;;  %p919_p3 = scmp.lt.s32.totalorder %s234_s8, %s234_s8 }
  0x24   : > { %p912_p7 = scmp.ne.s32.totalorder %s234_s8, %s911_s19  ;;  %p920_p6 = scmp.lt.s32.totalorder %s911_s19, %s911_s19 }
  0x26   : > { %p914_p9 = pnand %p912_p7, %p1552_p0  ;;  %p921_p8 = por %p920_p6, %p919_p3 }
  0x28   : > { %p915_p10 = pneg %p914_p9 }
  0x2a   : > { %p922_p12 = pnand %p921_p8, %p915_p10 }
  0x2c   : > { %925 = shalt.err (!%p922_p12)
}
  0x2d   : > { %810 = dma.hbm_to_vmem [thread:$0]  (!%p1269_p11), %s1570_s0, 128, %s234_s8, [#allocation3]  }
  0x2e   : > { %s28_s7 = sadd.s32 1, %s1158_s25  ;;  %s1301_s12 = sand.u32 1, %s1150_s23  }
  0x2f   : > { %p29_p3 = scmp.ge.s32.totalorder %s28_s7, 6  ;;  %s1550_s13 = sshll.u32 %s1301_s12, 4 }
  0x30   : > { %s1551_s14 = sshll.u32 %s1158_s25, 8  ;;  %s1572_s2 = sld [smem:[#allocation21_spill]] }
  0x31   : > { %s1599_s7 = smov (%p29_p3, %s28_s7), 0  ;;  %s261_s8 = scalar_lea.vmem [#allocation7], %s1550_s13 }
  0x32   : > { %1571 = sst [smem:[#allocation18_spill]] %s1599_s7  ;;  %s268_s18 = sshll.u32 %s261_s8, 4  ;;  %s1318_s18 = int_to_ptr.vmem [resolvable:$true] %s268_s18 }
  0x33   : > { %s87_s19 = ssub.s32 %s1158_s25, %s1599_s7  ;;  %s1327_s21 = scalar_lea.sflag [#allocation3], %s257_s9 }
  0x34   : > { %p88_p6 = scmp.eq.s32.totalorder %s87_s19, 0  ;;  %p1574_p12 = scmp.ne.s32.totalorder %s1569_s11, 0 }
  0x36   : > { %s1312_s17 = scalar_lea.hbm %s1572_s2, %s1551_s14  ;;  %p1333_p13 = pneg %p1574_p12 }
  0x37   : > { %s1323_s20 = scalar_select %p88_p6, %s1150_s23, %s90_s28  }
  0x38   : > { %s926_s15 = scalar_lea.hbm %s1312_s17, 256  ;;  %s931_s19 = scalar_lea.hbm %s1572_s2, 1536 }
  0x39   : > { %1573 = sst [smem:[#allocation19_spill]] %s1323_s20  ;;  %p927_p8 = scmp.ne.s32.totalorder %s1312_s17, %s926_s15 }
  0x3a   : > { %s1575_s16 = scalar_select %p1333_p13, 1, 0 }
  0x3b   : > { %p929_p1 = pnand %p1333_p13, %p927_p8  ;;  %p932_p4 = scmp.lt.u32.totalorder %s1312_s17, %s1572_s2 }
  0x3c   : > { %p933_p5 = scmp.lt.u32.totalorder %s931_s19, %s926_s15  ;;  %p935_p9 = scmp.lt.u32.totalorder %s926_s15, %s1312_s17 }
  0x3d   : > { %p930_p2 = pneg %p929_p1 }
  0x3e   : > { %p934_p7 = por %p933_p5, %p932_p4 }
  0x40   : > { %p936_p10 = por %p935_p9, %p934_p7 }
  0x42   : > { %p937_p3 = pnand %p936_p10, %p930_p2 }
  0x44   : > { %940 = shalt.err (!%p937_p3)
}
  0x45   : > { %s941_s9 = scalar_lea.vmem %s1318_s18, 256  ;;  %s1165_s13 = smov [#allocation7]  }
  0x46   : > { %p942_p6 = scmp.ne.s32.totalorder %s1318_s18, %s941_s9  ;;  %s946_s8 = sshll.u32 %s1165_s13, 4  ;;  %s947_s8 = int_to_ptr.vmem [resolvable:$false] %s946_s8 }
  0x47   : > { %s948_s14 = scalar_lea.vmem %s947_s8, 512  ;;  %p949_p0 = scmp.lt.s32.totalorder %s1318_s18, %s947_s8 }
  0x48   : > { %p944_p8 = pnand %p942_p6, %p1333_p13  ;;  %p950_p11 = scmp.lt.s32.totalorder %s948_s14, %s941_s9 }
  0x4a   : > { %p945_p1 = pneg %p944_p8  ;;  %p951_p4 = por %p950_p11, %p949_p0 }
  0x4c   : > { %p952_p5 = pnand %p951_p4, %p945_p1 }
  0x4e   : > { %955 = shalt.err (!%p952_p5)
}
  0x4f   : > { %s1166_s15 = smov 64   ;;  %s1167_s19 = smov 4  }
  0x50   : > { %817 = dma.hbm_to_vmem [thread:$0]  (!%p1574_p12), %s1312_s17, 256, %s1318_s18, %s1327_s21, %s1166_s15, %s1166_s15, %s1167_s19  }
  0x51   : > { %s737_s28 = sshll.u32 %s1158_s25, 4  ;;  %s281_s9 = scalar_lea.vmem [#allocation8], %s1301_s12 }
  0x52   : > { %s288_s13 = sshll.u32 %s281_s9, 4  ;;  %s286_s0 = scalar_lea.hbm %s1542_s3, %s737_s28  ;;  %s289_s13 = int_to_ptr.vmem [resolvable:$true] %s288_s13 }
  0x53   : > { %s956_s2 = scalar_lea.hbm %s286_s0, 16  ;;  %s961_s23 = scalar_lea.hbm %s1542_s3, 96 }
  0x54   : > { %p957_p11 = scmp.ne.s32.totalorder %s286_s0, %s956_s2  ;;  %p962_p7 = scmp.lt.u32.totalorder %s286_s0, %s1542_s3 }
  0x55   : > { %p963_p9 = scmp.lt.u32.totalorder %s961_s23, %s956_s2  ;;  %p965_p3 = scmp.lt.u32.totalorder %s956_s2, %s286_s0 }
  0x56   : > { %p959_p0 = pnand %p957_p11, %p1333_p13 }
  0x57   : > { %p964_p10 = por %p963_p9, %p962_p7 }
  0x58   : > { %p960_p2 = pneg %p959_p0 }
  0x59   : > { %p966_p6 = por %p965_p3, %p964_p10 }
  0x5b   : > { %p967_p8 = pnand %p966_p6, %p960_p2 }
  0x5d   : > { %970 = shalt.err (!%p967_p8)
}
  0x5e   : > { %s971_s18 = scalar_lea.vmem %s289_s13, 16  ;;  %s1168_s9 = smov [#allocation8]  }
  0x5f   : > { %p972_p1 = scmp.ne.s32.totalorder %s289_s13, %s971_s18  ;;  %s976_s8 = sshll.u32 %s1168_s9, 4  ;;  %s977_s8 = int_to_ptr.vmem [resolvable:$false] %s976_s8 }
  0x60   : > { %s978_s7 = scalar_lea.vmem %s977_s8, 32  ;;  %p979_p11 = scmp.lt.s32.totalorder %s289_s13, %s977_s8 }
  0x61   : > { %p974_p4 = pnand %p972_p1, %p1333_p13  ;;  %p980_p0 = scmp.lt.s32.totalorder %s978_s7, %s971_s18 }
  0x63   : > { %p975_p5 = pneg %p974_p4  ;;  %p981_p12 = por %p980_p0, %p979_p11 }
  0x65   : > { %p982_p7 = pnand %p981_p12, %p975_p5 }
  0x67   : > { %985 = shalt.err (!%p982_p7)
}
  0x68   : > { %p1576_p9 = scmp.ne.s32.totalorder %s1569_s11, 0  ;;  %s1577_s2 = sshll.u32 %s1158_s25, 8 }
  0x69   : > { %s1385_s20 = scalar_lea.hbm %s1543_s4, %s1577_s2  ;;  %s1578_s14 = sshll.u32 %s1301_s12, 4 }
  0x6a   : > { %820 = dma.hbm_to_vmem [thread:$0]  (!%p1576_p9), %s286_s0, 16, %s289_s13, %s1327_s21  }
  0x6b   : > { %s299_s17 = scalar_lea.vmem [#allocation9], %s1578_s14  ;;  %s1169_s9 = smov [#allocation5]  }
  0x6c   : > { %s306_s18 = sshll.u32 %s299_s17, 4  ;;  %s1391_s8 = sshll.u32 %s1169_s9, 4  ;;  %s1389_s18 = int_to_ptr.vmem [resolvable:$true] %s306_s18  ;;  %s247_s8 = int_to_ptr.vmem [resolvable:$true] %s1391_s8 }
  0x6d   : > { %s986_s7 = scalar_lea.hbm %s1385_s20, 256  ;;  %s991_s2 = scalar_lea.hbm %s1543_s4, 1536 }
  0x6e   : > { %p987_p12 = scmp.ne.s32.totalorder %s1385_s20, %s986_s7  ;;  %p992_p3 = scmp.lt.u32.totalorder %s1385_s20, %s1543_s4 }
  0x6f   : > { %p993_p6 = scmp.lt.u32.totalorder %s991_s2, %s986_s7  ;;  %p995_p1 = scmp.lt.u32.totalorder %s986_s7, %s1385_s20 }
  0x70   : > { %p989_p2 = pnand %p987_p12, %p1333_p13 }
  0x71   : > { %p994_p8 = por %p993_p6, %p992_p3 }
  0x72   : > { %p990_p10 = pneg %p989_p2 }
  0x73   : > { %p996_p4 = por %p995_p1, %p994_p8 }
  0x75   : > { %p997_p5 = pnand %p996_p4, %p990_p10 }
  0x77   : > { %1000 = shalt.err (!%p997_p5)
}
  0x78   : > { %s1001_s14 = scalar_lea.vmem %s1389_s18, 256  ;;  %s1170_s17 = smov [#allocation9]  }
  0x79   : > { %p1002_p11 = scmp.ne.s32.totalorder %s1389_s18, %s1001_s14  ;;  %s1006_s9 = sshll.u32 %s1170_s17, 4  ;;  %s1007_s9 = int_to_ptr.vmem [resolvable:$false] %s1006_s9 }
  0x7a   : > { %s1008_s0 = scalar_lea.vmem %s1007_s9, 512  ;;  %p1009_p12 = scmp.lt.s32.totalorder %s1389_s18, %s1007_s9 }
  0x7b   : > { %p1004_p0 = pnand %p1002_p11, %p1333_p13  ;;  %p1010_p2 = scmp.lt.s32.totalorder %s1008_s0, %s1001_s14 }
  0x7d   : > { %p1005_p7 = pneg %p1004_p0  ;;  %p1011_p3 = por %p1010_p2, %p1009_p12 }
  0x7f   : > { %p1012_p6 = pnand %p1011_p3, %p1005_p7 }
  0x81   : > { %1015 = shalt.err (!%p1012_p6)
}
  0x82   : > { %823 = dma.hbm_to_vmem [thread:$0]  (!%p1576_p9), %s1385_s20, 256, %s1389_s18, %s1327_s21, %s1166_s15, %s1166_s15, %s1167_s19  }
  0x83   : > { %s1016_s2 = scalar_lea.hbm %s1540_s1, 64  ;;  %p1579_p8 = scmp.ne.s32.totalorder %s1568_s10, 0 }
  0x84   : > { %p1017_p10 = scmp.ne.s32.totalorder %s1540_s1, %s1016_s2  ;;  %p1023_p11 = scmp.lt.u32.totalorder %s1016_s2, %s1540_s1 }
  0x85   : > { %p1580_p1 = pneg %p1579_p8 }
  0x87   : > { %p1019_p4 = pnand %p1017_p10, %p1580_p1 }
  0x89   : > { %p1020_p5 = pneg %p1019_p4 }
  0x8b   : > { %p1025_p0 = pnand %p1023_p11, %p1020_p5 }
  0x8d   : > { %1028 = shalt.err (!%p1025_p0)
}
  0x8e   : > { %s1029_s15 = scalar_lea.vmem %s247_s8, 64  ;;  %p1581_p12 = pmov %p1580_p1 }
  0x8f   : > { %p1030_p7 = scmp.ne.s32.totalorder %s247_s8, %s1029_s15  ;;  %p1037_p6 = scmp.lt.s32.totalorder %s247_s8, %s247_s8 }
  0x90   : > { %p1038_p9 = scmp.lt.s32.totalorder %s1029_s15, %s1029_s15 }
  0x91   : > { %p1032_p2 = pnand %p1030_p7, %p1581_p12 }
  0x92   : > { %p1039_p13 = por %p1038_p9, %p1037_p6 }
  0x93   : > { %p1033_p3 = pneg %p1032_p2 }
  0x95   : > { %p1040_p1 = pnand %p1039_p13, %p1033_p3 }
  0x97   : > { %1043 = shalt.err (!%p1040_p1)
}
  0x98   : > { %813 = dma.hbm_to_vmem [thread:$0]  (!%p1579_p8), %s1540_s1, 64, %s247_s8, [#allocation6]  }
  0x99   : > { %s1444_s0 = scalar_lea.hbm %s1544_s5, %s737_s28  ;;  %s319_s7 = scalar_lea.vmem [#allocation10], %s1301_s12 }
  0x9a   : > { %s326_s13 = sshll.u32 %s319_s7, 4  ;;  %s1044_s10 = scalar_lea.hbm %s1444_s0, 16  ;;  %s327_s13 = int_to_ptr.vmem [resolvable:$true] %s326_s13 }
  0x9b   : > { %p1045_p13 = scmp.ne.s32.totalorder %s1444_s0, %s1044_s10  ;;  %p1582_p9 = scmp.ne.s32.totalorder %s1575_s16, 0 }
  0x9c   : > { %s1049_s23 = scalar_lea.hbm %s1544_s5, 96  ;;  %p1050_p8 = scmp.lt.u32.totalorder %s1444_s0, %s1544_s5 }
  0x9d   : > { %p1047_p10 = pnand %p1045_p13, %p1582_p9  ;;  %p1051_p5 = scmp.lt.u32.totalorder %s1049_s23, %s1044_s10 }
  0x9e   : > { %p1053_p0 = scmp.lt.u32.totalorder %s1044_s10, %s1444_s0 }
  0x9f   : > { %p1048_p4 = pneg %p1047_p10  ;;  %p1052_p11 = por %p1051_p5, %p1050_p8 }
  0xa1   : > { %p1054_p7 = por %p1053_p0, %p1052_p11 }
  0xa3   : > { %p1055_p12 = pnand %p1054_p7, %p1048_p4 }
  0xa5   : > { %1058 = shalt.err (!%p1055_p12)
}
  0xa6   : > { %s1059_s12 = scalar_lea.vmem %s327_s13, 16  ;;  %s1171_s28 = smov [#allocation10]  }
  0xa7   : > { %p1060_p2 = scmp.ne.s32.totalorder %s327_s13, %s1059_s12  ;;  %s1064_s17 = sshll.u32 %s1171_s28, 4  ;;  %s1065_s17 = int_to_ptr.vmem [resolvable:$false] %s1064_s17 }
  0xa8   : > { %s1066_s15 = scalar_lea.vmem %s1065_s17, 32  ;;  %p1067_p1 = scmp.lt.s32.totalorder %s327_s13, %s1065_s17 }
  0xa9   : > { %p1062_p3 = pnand %p1060_p2, %p1582_p9  ;;  %p1068_p13 = scmp.lt.s32.totalorder %s1066_s15, %s1059_s12 }
  0xab   : > { %p1063_p6 = pneg %p1062_p3  ;;  %p1069_p10 = por %p1068_p13, %p1067_p1 }
  0xad   : > { %p1070_p5 = pnand %p1069_p10, %p1063_p6 }
  0xaf   : > { %1073 = shalt.err (!%p1070_p5)
}
  0xb0   : > { %p1583_p8 = scmp.ne.s32.totalorder %s1569_s11, 0  ;;  %p1584_p4 = scmp.ne.s32.totalorder %s1567_s30, 0 }
  0xb1   : > { %p1585_p9 = scmp.eq.s32.totalorder (!%p1584_p4), %s1243_s27, 0 }
  0xb2   : > { %826 = dma.hbm_to_vmem [thread:$0]  (!%p1583_p8), %s1444_s0, 16, %s327_s13, %s1327_s21  }
  0xb3   : > { %335 = sbr.rel (%p1584_p4) target bundleno = 872 (0x368), region = 44 }
  0xba   : > { %1125 = dma.done.wait (%p1585_p9), [#allocation3], 128   ;;  %p1586_p11 = pmov %p1585_p9 }
  0xbb   : > { %p1587_p0 = pmov %p1585_p9 }
  0xbc   : > { %1127 = vsyncadd (%p1586_p11), [#allocation3], 4294967168 }
  0xbd   : > { %1129 = dma.done.wait (%p1587_p0), [#allocation6], 64   ;;  %p1588_p7 = pmov %p1587_p0 }
  0xbe   : > { %s345_s11 = sand.u32 1, %s1243_s27   ;;  %s1477_s21 = sand.u32 1, %s1146_s22  }
  0xbf   : > { %1131 = vsyncadd (%p1588_p7), [#allocation6], 4294967232  ;;  %s745_s30 = sshll.u32 %s1477_s21, 4  ;;  %s346_s16 = scalar_lea.sflag [#allocation3], %s345_s11 }
  0xc0   : > { %s1480_s19 = scalar_lea.vmem [#allocation7], %s745_s30  ;;  %p1589_p12 = scmp.ne.s32.totalorder %s1566_s29, 0 }
  0xc2   : > { %1133 = dma.done.wait (%p1589_p12), %s346_s16, 544  }
  0xc3   : > { %1135 = vsyncadd (%p1589_p12), %s346_s16, 4294966752  ;;  %v413_v0 = vstv %s1154_s24  ;;  %v412_v1 = vld [vmem:[#allocation2] sm:$0xff]  ;;  %vm417_vm0 = vcmask 7168   ;;  %v1172_v2 = vmov 0   ;;  %v1173_v4 = vmov 0.0   ;;  %s357_s20 = scalar_lea.vmem [#allocation8], %s1477_s21 }
  0xc4   : > { %vm414_vm1 = vcmp.eq.s32.totalorder %v412_v1, %v413_v0  ;;  %s366_s18 = scalar_lea.vmem [#allocation9], %s745_s30  ;;  %s374_s9 = scalar_lea.vmem [#allocation10], %s1477_s21 }
  0xc5   : > { %v415_v3 = vsel %vm414_vm1, 1, %v1172_v2  ;;  %v747_v5 = vsel %vm414_vm1, 1.0, %v1173_v4  ;;  %p748_p3 = scmp.ne.s32.totalorder %s1154_s24, 0 }
  0xc6   : > { %v418_v6 = vsel %vm417_vm0, %v747_v5, 0.0  ;;  %vm433_vm2 = vcmask (!%p748_p3), 15360   ;;  %v1174_v14 = vmov (!%p748_p3), 0.0  }
  0xc7   : > { %419 = vadd.xlane.f32.xlu0 %v418_v6  ;;  %434 = vst.msk [vmem:[#allocation11] sm:$0xff] (!%p748_p3), %vm433_vm2, %v1174_v14 }
 0x154   : > { %v420_v7 = vpop.xlane.xlu0 %419 }
 0x155   : > { %v421_v8 = vrot.slane %v420_v7, 4 }
 0x157   : > { %v422_v9 = vadd.f32 %v421_v8, %v420_v7 }
 0x159   : > { %v423_v10 = vrot.slane %v422_v9, 2 }
 0x15b   : > { %v424_v11 = vadd.f32 %v423_v10, %v422_v9 }
 0x15d   : > { %v425_v12 = vrot.slane %v424_v11, 1 }
 0x15f   : > { %v426_v13 = vadd.f32 %v425_v12, %v424_v11 }
 0x161   : > { %785 = vpush %v426_v13 }
 0x18d   : > { %432 = sbr.rel (%p748_p3) target bundleno = 404 (0x194), region = 72 }
 0x192   : > { %s786_s29 = spop %785 }
 0x193   : > { %p428_p2 = scmp.gt.f32.partialorder %s786_s29, 0.0 }
 0x194 PF: > { %v894_v15 = vld [vmem:[%s1480_s19] sm:$0xff] (%p428_p2)   ;;  %v1175_v16 = vmov (%p428_p2), 0.0   ;;  %v895_v17 = vld [vmem:[%s1480_s19 + $0x8] sm:$0xff] (%p428_p2)   ;;  %vm1176_vm3 = vmmov (%p428_p2), 0   ;;  %vm462_vm4 = vcmask (%p428_p2), 261120   ;;  %v1177_v21 = vmov (%p428_p2), 0  }
 0x195   : > { %437 = sbr.rel (!%p428_p2) target bundleno = 847 (0x34f), region = 76  ;;  %769 = vmatprep.subr.bf16.mxu0 (%p428_p2), %v1175_v16  ;;  %777 = vmatprep.subr.bf16.mxu1 (%p428_p2), %v1175_v16  ;;  %v438_v18 = vld [vmem:[#allocation5] sm:$0xf] (%p428_p2)  ;;  %v896_v19 = vld [vmem:[%s366_s18] sm:$0xff] (%p428_p2)   ;;  %vm580_vm6 = vcmask (%p428_p2), 15360  }
 0x196   : > { %770 = vmatpush3.bf16.msra.mxu0 (%p428_p2), %v894_v15  ;;  %773 = vmatprep.mubr.msk.bf16.mxu0 (%p428_p2), %vm1176_vm3, %v1175_v16  ;;  %v897_v20 = vld [vmem:[%s366_s18 + $0x8] sm:$0xff] (%p428_p2)   ;;  %v749_v22 = vld [vmem:[%s357_s20] ss:$0 sm:$0xff] (%p428_p2) }
 0x197   : > { %771 = vmatprep.subr.bf16.mxu0 (%p428_p2), %v1175_v16  ;;  %781 = vmatprep.mubr.msk.bf16.mxu1 (%p428_p2), %vm1176_vm3, %v1175_v16  ;;  %v753_v31 = vld [vmem:[%s374_s9] ss:$0 sm:$0xff] (%p428_p2)  ;;  %v574_v33 = vld [vmem:[#allocation11] sm:$0xff] (%p428_p2) }
 0x198   : > { %778 = vmatpush3.bf16.msra.mxu1 (%p428_p2), %v896_v19  ;;  %893 = vset.pattern.permute.xlu0 (%p428_p2), %v1177_v21 }
 0x199   : > { %779 = vmatprep.subr.bf16.mxu1 (%p428_p2), %v1175_v16  ;;  %576 = vperm.xlu0 (%p428_p2), %893, %v415_v3  }
 0x19a   : > { %772 = vmatpush3.bf16.msra.mxu0 (%p428_p2), %v895_v17 }
 0x19c   : > { %780 = vmatpush3.bf16.msra.mxu1 %v897_v20 }
 0x19d   : > { %774 = vmatmul.mubr.msk.bf16.vlgmr.msra.gmra.mrb[0].mxu0 %vm462_vm4, %v438_v18 }
 0x218   : > { %v577_v30 = vpop.permute.xlu0 %576 }
 0x219   : > { %vm578_vm5 = vcmp.eq.s32.totalorder %v577_v30, 1 }
 0x270   : > { %v500_v23 = vpop.f32.mrb[0].mxu0 }
 0x271   : > { %v501_v24 = vadd.f32 %v749_v22, %v500_v23  ;;  %v775_v25 = vpop.f32.mrb[1].mxu0 }
 0x272   : > { %v503_v26 = vpop.f32.mrb[2].mxu0 }
 0x273   : > { %v506_v27 = vmax.f32 %v501_v24, 0.0  ;;  %v776_v28 = vpop.f32.mrb[3].mxu0 }
 0x275   : > { %v507_v29 = vpack.c.bf16 %v506_v27, %v506_v27 }
 0x277   : > { %782 = vmatmul.mubr.msk.bf16.vlgmr.msra.gmra.mrb[0].mxu1 %vm462_vm4, %v507_v29 }
 0x34a   : > { %v568_v32 = vpop.f32.mrb[0].mxu1 }
 0x34b   : > { %v569_v34 = vadd.f32 %v753_v31, %v568_v32  ;;  %v783_v35 = vpop.f32.mrb[1].mxu1 }
 0x34c   : > { %v571_v36 = vpop.f32.mrb[2].mxu1 }
 0x34d   : > { %v579_v37 = vsel %vm578_vm5, %v569_v34, %v574_v33  ;;  %v784_v38 = vpop.f32.mrb[3].mxu1 }
 0x34e   : > { %581 = vst.msk [vmem:[#allocation11] sm:$0xff] %vm580_vm6, %v579_v37 }
 0x34f PF: > { %p832_p6 = scmp.eq.s32.totalorder %s1243_s27, 5  ;;  %s1178_s24 = smov [#allocation11]  }
 0x350   : > { %s591_s0 = sshll.u32 %s1178_s24, 4  ;;  %s592_s0 = int_to_ptr.vmem [resolvable:$true] %s591_s0 }
 0x351   : > { %s1074_s7 = scalar_lea.vmem %s592_s0, 128  ;;  %p1081_p5 = scmp.lt.s32.totalorder %s592_s0, %s592_s0 }
 0x352   : > { %p1075_p1 = scmp.ne.s32.totalorder %s592_s0, %s1074_s7  ;;  %p1082_p8 = scmp.lt.s32.totalorder %s1074_s7, %s1074_s7 }
 0x354   : > { %p1076_p13 = pnand %p1075_p1, %p832_p6  ;;  %p1083_p4 = por %p1082_p8, %p1081_p5 }
 0x356   : > { %p1077_p10 = pneg %p1076_p13 }
 0x358   : > { %p1084_p9 = pnand %p1083_p4, %p1077_p10 }
 0x35a   : > { %1087 = shalt.err (!%p1084_p9)
}
 0x35b   : > { %s1088_s2 = scalar_lea.hbm %s1545_s6, 128 }
 0x35c   : > { %p1089_p11 = scmp.ne.s32.totalorder %s1545_s6, %s1088_s2  ;;  %p1094_p12 = scmp.lt.u32.totalorder %s1088_s2, %s1545_s6 }
 0x35e   : > { %p1090_p0 = pnand %p1089_p11, %p832_p6 }
 0x360   : > { %p1091_p7 = pneg %p1090_p0 }
 0x362   : > { %p1096_p2 = pnand %p1094_p12, %p1091_p7 }
 0x364   : > { %1099 = shalt.err (!%p1096_p2)
}
 0x365   : > { %804 = dma.vmem_to_hbm [thread:$0]  (%p832_p6), %s592_s0, 128, %s1545_s6, [#allocation4]  }
 0x366   : > { %1137 = dma.done.wait (%p832_p6), [#allocation4], 128  }
 0x367   : > { %1139 = vsyncadd (%p832_p6), [#allocation4], 4294967168 }
 0x368 PF: > { %s1590_s17 = sld [smem:[#allocation17_spill]]  ;;  %s1591_s15 = sld [smem:[#allocation16_spill]] }
 0x369   : > { %s1592_s23 = sld [smem:[#allocation19_spill]]  ;;  %s1593_s11 = sld [smem:[#allocation18_spill]] }
 0x36a   : > { %s1594_s21 = smov %s1146_s22  ;;  %s1596_s24 = smov %s1158_s25 }
 0x36e   : > { %s19_s26 = sadd.s32 1, %s1590_s17   ;;  %s1595_s22 = smov %s1591_s15 }
 0x36f   : > { %p16_p3 = scmp.ge.s32.totalorder %s19_s26, 8   ;;  %s1597_s25 = smov %s1593_s11 }
 0x371   :  { %18 = sbr.rel (!%p16_p3) target bundleno = 8 (0x8), region = 132 }
 0x378   :  { %604 = vsyncpa [#allocation3], 1 }
 0x379   :  { %606 = vsyncpa [#allocation3 + $0x1], 1 }
 0x37a   :  { %607 = vsyncpa [#allocation6], 1 }
 0x37b   :  { %608 = vsyncpa [#allocation4], 1 }
 0x37c   :  { %610 = vsyncpa [#allocation4 + $0x1], 1 }

</bundles_post_ra>
